<compile_context>
chip_gen: v7x
topology: tpu7x:2x2x1
jax: 0.10.0
libtpu: 0.0.40
codegen_flags: <defaults>
</compile_context>

<pallas_src>
import functools

import jax
import jax.numpy as jnp
from jax import lax
from jax.experimental import pallas as pl
from jax.experimental.pallas import tpu as pltpu

_VMEM_LIMIT_BYTES = 48 * 1024 * 1024  # headroom-safe on v5e/v6e (128 MiB) and v7x (64 MiB)


# ---------------------------------------------------------------------------
# Cross-entropy: one launch, tiled over the batch, no materialized one-hot.
# ---------------------------------------------------------------------------
def _ce_kernel(logits_ref, tgt_ref, o_ref, acc_ref, *, n_rows):
    """Accumulates sum_i (logsumexp(x_i) - x_i[target_i]); final step divides by N."""
    i = pl.program_id(0)
    tile_n = logits_ref.shape[0]

    x = logits_ref[...].astype(jnp.float32)                    # (T, C)
    t = tgt_ref[...]                                           # (T, 1) int32

    row = lax.broadcasted_iota(jnp.int32, x.shape, 0) + i * tile_n
    col = lax.broadcasted_iota(jnp.int32, x.shape, 1)
    valid = row < n_rows                                       # mask padded rows of edge tile
    x = jnp.where(valid, x, 0.0)

    m = jnp.max(x, axis=-1, keepdims=True)
    lse = jnp.log(jnp.sum(jnp.exp(x - m), axis=-1, keepdims=True)) + m
    tgt_logit = jnp.sum(jnp.where(col == t, x, 0.0), axis=-1, keepdims=True)
    per_row = lse - tgt_logit                                  # (T, 1)

    row_valid = (lax.broadcasted_iota(jnp.int32, per_row.shape, 0) + i * tile_n) < n_rows
    partial = jnp.sum(jnp.where(row_valid, per_row, 0.0))

    @pl.when(i == 0)
    def _():
        acc_ref[...] = jnp.zeros_like(acc_ref)

    acc_ref[...] += partial

    @pl.when(i == pl.num_programs(0) - 1)
    def _():
        o_ref[...] = acc_ref[...] * (1.0 / n_rows)


def _ce_tile_rows(n_rows, n_cols):
    """Row-tile sized for ~2 MiB per logits block (double-buffered; fits v7x VMEM)."""
    budget = 2 * 1024 * 1024
    rows = budget // (4 * n_cols)
    rows = max(8, min(1024, (rows // 8) * 8))
    return n_rows if n_rows <= rows else rows


def cross_entropy_mean(logits, targets):
    n, c = logits.shape
    tile_n = _ce_tile_rows(n, c)
    grid = (pl.cdiv(n, tile_n),)
    tgt2d = targets.astype(jnp.int32).reshape(n, 1)
    out = pl.pallas_call(
        functools.partial(_ce_kernel, n_rows=n),
        out_shape=jax.ShapeDtypeStruct((1, 1), jnp.float32),
        grid_spec=pltpu.PrefetchScalarGridSpec(
            num_scalar_prefetch=0,
            grid=grid,
            in_specs=[pl.BlockSpec((tile_n, c), lambda i: (i, 0)),
                      pl.BlockSpec((tile_n, 1), lambda i: (i, 0))],
            out_specs=pl.BlockSpec((1, 1), lambda i: (0, 0)),
            scratch_shapes=[pltpu.VMEM((1, 1), jnp.float32)]),
        compiler_params=pltpu.CompilerParams(
            dimension_semantics=("arbitrary",),
            vmem_limit_bytes=_VMEM_LIMIT_BYTES),
    )(logits, tgt2d)
    return out[0, 0]


# ---------------------------------------------------------------------------
# Fused regularizers: all layers' L1 and L2 terms in ONE pallas_call.
# ---------------------------------------------------------------------------
def _reg_kernel(*refs, n_l1, n_l2, alpha):
    coeff_refs = refs[:n_l1]
    bw_refs = refs[n_l1:n_l1 + n_l2]
    l1_ref = refs[n_l1 + n_l2]
    l2_ref = refs[n_l1 + n_l2 + 1]

    # ----- basisL1Loss: mean over layers of mean(|coefficients|) -----
    if n_l1 > 0:
        l1 = jnp.float32(0.0)
        for c_ref in coeff_refs:
            c = c_ref[...].astype(jnp.float32)
            l1 = l1 + jnp.sum(jnp.abs(c)) * (1.0 / c.size)
        l1_ref[0, 0] = l1 * (1.0 / n_l1)
    else:
        l1_ref[0, 0] = jnp.float32(0.0)

    # ----- basisL2Loss: summed over layers -----
    l2 = jnp.float32(0.0)
    for w_ref in bw_refs:
        w = w_ref[...].astype(jnp.float32)                     # (Q, D) rows = basis filters
        q = w.shape[0]
        nrm = jnp.sqrt(jnp.sum(w * w, axis=1, keepdims=True))
        wn = w / jnp.maximum(nrm, 1e-12)                       # F.normalize(..., eps=1e-12)
        # Gram on the MXU: (Q, D) x (Q, D) contracting D -> (Q, Q)
        g = jnp.abs(lax.dot_general(wn, wn, (((1,), (1,)), ((), ())),
                                    preferred_element_type=jnp.float32))
        g2 = g * g
        eye = (lax.broadcasted_iota(jnp.int32, (q, q), 0)
               == lax.broadcasted_iota(jnp.int32, (q, q), 1))
        diag_sq = jnp.sum(jnp.where(eye, g2, 0.0))
        total_sq = jnp.sum(g2)
        dp_diag = jnp.float32(q) - diag_sq                     # sum_i (1 - g_ii^2)
        dp_else = (total_sq - diag_sq) * 0.5                   # sum_{i<j} g_ij^2 (g symmetric)
        l2 = l2 + (alpha * dp_diag / q
                   + 2.0 * (1.0 - alpha) / (q * (q - 1)) * dp_else)
    l2_ref[0, 0] = l2


def _regularizer_losses(coeff_arrays, bw_arrays, alpha):
    n_l1, n_l2 = len(coeff_arrays), len(bw_arrays)
    if n_l1 == 0 and n_l2 == 0:
        z = jnp.float32(0.0)
        return z, z
    kernel = functools.partial(_reg_kernel, n_l1=n_l1, n_l2=n_l2, alpha=alpha)
    l1_out, l2_out = pl.pallas_call(
        kernel,
        out_shape=(jax.ShapeDtypeStruct((1, 1), jnp.float32),
                   jax.ShapeDtypeStruct((1, 1), jnp.float32)),
        in_specs=[pl.BlockSpec(memory_space=pltpu.MemorySpace.VMEM)] * (n_l1 + n_l2),
        out_specs=(pl.BlockSpec(memory_space=pltpu.MemorySpace.SMEM),
                   pl.BlockSpec(memory_space=pltpu.MemorySpace.SMEM)),
        compiler_params=pltpu.CompilerParams(vmem_limit_bytes=_VMEM_LIMIT_BYTES),
    )(*coeff_arrays, *bw_arrays)
    return l1_out[0, 0], l2_out[0, 0]


# ---------------------------------------------------------------------------
# basisCombinationLoss wrapper
# ---------------------------------------------------------------------------
def basis_combination_loss(layers, outputs, targets, *,
                           w1, w2, skip_1by1=False, alpha=0.5):
    """Returns (loss, loss_ce, loss_l1, loss_l2) as the PyTorch module does.

    `layers` is a list of dicts standing in for the basisConv2d modules:
      { "coefficients": (Cout, Q) f32,
        "basis_weight": (Q, Cin, kh, kw) f32,
        "org_weight_shape": (Cout, Cin, kh, kw) }
    """
    loss_ce = cross_entropy_mean(outputs, targets)

    coeff_arrays = []
    if w1 > 0:
        for layer in layers:
            if (not skip_1by1) or layer["org_weight_shape"][-1] > 1:
                coeff = layer["coefficients"]
                coeff_arrays.append(coeff.reshape(coeff.shape[0], -1))

    bw_arrays = []
    if w2 > 0:
        for layer in layers:
            bw = layer["basis_weight"]
            q = bw.shape[0]
            if q == 1:
                continue
            bw_arrays.append(bw.reshape(q, -1))

    # TODO(synk): PyTorch reference divides by zero when w1>0 but every layer is
    # skipped (all 1x1 convs with skip_1by1=True); we return 0 for loss_l1 instead.
    loss_l1, loss_l2 = _regularizer_losses(coeff_arrays, bw_arrays, alpha)

    loss = w1 * loss_l1 + w2 * loss_l2 + loss_ce
    return loss, loss_ce, loss_l1, loss_l2


# ---------------------------------------------------------------------------
# Demo / smoke test
# ---------------------------------------------------------------------------
if __name__ == "__main__":
    key = jax.random.PRNGKey(0)
    k1, k2, k3, k4, k5, k6 = jax.random.split(key, 6)

    # Synthetic "basis model": two basisConv2d layers (deterministic params).
    layers = [
        {   # 3x3 conv: Cout=8, Cin=4, Q=6 basis filters
            "coefficients": jax.random.normal(k1, (8, 6), dtype=jnp.float32),
            "basis_weight": jax.random.normal(k2, (6, 4, 3, 3), dtype=jnp.float32),
            "org_weight_shape": (8, 4, 3, 3),
        },
        {   # 1x1 conv: Cout=16, Cin=8, Q=4 basis filters
            "coefficients": jax.random.normal(k3, (16, 4), dtype=jnp.float32),
            "basis_weight": jax.random.normal(k4, (4, 8, 1, 1), dtype=jnp.float32),
            "org_weight_shape": (16, 8, 1, 1),
        },
    ]

    batch, num_classes = 8, 16
    outputs = jax.random.normal(k5, (batch, num_classes), dtype=jnp.float32)
    targets = jax.random.randint(k6, (batch,), 0, num_classes, dtype=jnp.int32)

    loss, loss_ce, loss_l1, loss_l2 = basis_combination_loss(
        layers, outputs, targets, w1=1.0, w2=1.0, skip_1by1=False, alpha=0.5)
    jax.block_until_ready((loss, loss_ce, loss_l1, loss_l2))

    # Pure-JAX reference check (raises on mismatch; silent on success).
    logp = jax.nn.log_softmax(outputs, axis=-1)
    ref_ce = -jnp.mean(jnp.take_along_axis(logp, targets[:, None], axis=1))
    ref_l1 = sum(jnp.mean(jnp.abs(l["coefficients"])) for l in layers) / len(layers)
    ref_l2 = jnp.float32(0.0)
    for l in layers:
        bw = l["basis_weight"]
        q = bw.shape[0]
        if q == 1:
            continue
        w2d = bw.reshape(q, -1)
        wn = w2d / jnp.maximum(jnp.linalg.norm(w2d, axis=1, keepdims=True), 1e-12)
        g = jnp.abs(wn @ wn.T)
        dp_diag = jnp.sum(1.0 - jnp.diag(g) ** 2)
        dp_else = jnp.sum(jnp.triu(g, 1) ** 2)
        ref_l2 = ref_l2 + 0.5 * dp_diag / q + 2.0 * 0.5 / (q * (q - 1)) * dp_else
    ref_loss = ref_ce + ref_l1 + ref_l2
    for got, want in zip((loss, loss_ce, loss_l1, loss_l2),
                         (ref_loss, ref_ce, ref_l1, ref_l2)):
        assert jnp.allclose(got, want, rtol=1e-4, atol=1e-4), (got, want)

    print("KERNEL_OK")
</pallas_src>

<mosaic_0001>
module attributes {stable_mosaic.version = 11 : i64} {
  func.func @_ce_kernel(%arg0: i32, %arg1: memref<8x16xf32, #tpu.memory_space<vmem>>, %arg2: memref<8x1xi32, #tpu.memory_space<vmem>>, %arg3: memref<1x1xf32, #tpu.memory_space<vmem>>, %arg4: memref<1x1xf32, #tpu.memory_space<vmem>>) attributes {dimension_semantics = [#tpu.dimension_semantics<arbitrary>], iteration_bounds = array<i64: 1>, scalar_prefetch = 0 : i64, scratch_operands = 1 : i64, tpu.core_type = #tpu.core_type<tc>, window_params = [{transform_indices = @transform_0, window_bounds = array<i64: 8, 16>}, {transform_indices = @transform_1, window_bounds = array<i64: 8, 1>}, {pipeline_mode = #tpu.pipeline_mode<synchronous>, transform_indices = @transform_2, window_bounds = array<i64: 1, 1>}]} {
    %c0 = arith.constant 0 : index
    %c0_0 = arith.constant 0 : index
    %0 = vector.load %arg1[%c0, %c0_0] : memref<8x16xf32, #tpu.memory_space<vmem>>, vector<8x16xf32>
    %c0_1 = arith.constant 0 : index
    %c0_2 = arith.constant 0 : index
    %1 = vector.load %arg2[%c0_1, %c0_2] : memref<8x1xi32, #tpu.memory_space<vmem>>, vector<8x1xi32>
    %2 = tpu.iota {dimensions = array<i32: 0>} : vector<8x16xi32>
    %c8_i32 = arith.constant 8 : i32
    %3 = arith.muli %arg0, %c8_i32 : i32
    %4 = vector.broadcast %3 : i32 to vector<8x16xi32>
    %5 = arith.addi %2, %4 : vector<8x16xi32>
    %6 = tpu.iota {dimensions = array<i32: 1>} : vector<8x16xi32>
    %c8_i32_3 = arith.constant 8 : i32
    %7 = vector.broadcast %c8_i32_3 : i32 to vector<8x16xi32>
    %8 = arith.cmpi slt, %5, %7 : vector<8x16xi32>
    %cst = arith.constant 0.000000e+00 : f32
    %9 = vector.broadcast %cst : f32 to vector<8x16xf32>
    %10 = arith.select %8, %0, %9 : vector<8x16xi1>, vector<8x16xf32>
    %cst_4 = arith.constant dense<0xFF800000> : vector<8xf32>
    %11 = vector.multi_reduction <maximumf>, %10, %cst_4 [1] : vector<8x16xf32> to vector<8xf32>
    %12 = vector.shape_cast %11 : vector<8xf32> to vector<8x1xf32>
    %13 = vector.broadcast %12 : vector<8x1xf32> to vector<8x16xf32>
    %14 = arith.subf %10, %13 : vector<8x16xf32>
    %15 = math.exp %14 : vector<8x16xf32>
    %cst_5 = arith.constant dense<0.000000e+00> : vector<8xf32>
    %16 = vector.multi_reduction <add>, %15, %cst_5 [1] : vector<8x16xf32> to vector<8xf32>
    %17 = vector.shape_cast %16 : vector<8xf32> to vector<8x1xf32>
    %18 = math.log %17 : vector<8x1xf32>
    %19 = arith.addf %18, %12 : vector<8x1xf32>
    %20 = vector.broadcast %1 : vector<8x1xi32> to vector<8x16xi32>
    %21 = arith.cmpi eq, %6, %20 : vector<8x16xi32>
    %cst_6 = arith.constant 0.000000e+00 : f32
    %22 = vector.broadcast %cst_6 : f32 to vector<8x16xf32>
    %23 = arith.select %21, %10, %22 : vector<8x16xi1>, vector<8x16xf32>
    %cst_7 = arith.constant dense<0.000000e+00> : vector<8xf32>
    %24 = vector.multi_reduction <add>, %23, %cst_7 [1] : vector<8x16xf32> to vector<8xf32>
    %25 = vector.shape_cast %24 : vector<8xf32> to vector<8x1xf32>
    %26 = arith.subf %19, %25 : vector<8x1xf32>
    %27 = tpu.iota {dimensions = array<i32: 0>} : vector<8x1xi32>
    %c8_i32_8 = arith.constant 8 : i32
    %28 = arith.muli %arg0, %c8_i32_8 : i32
    %29 = vector.broadcast %28 : i32 to vector<8x1xi32>
    %30 = arith.addi %27, %29 : vector<8x1xi32>
    %c8_i32_9 = arith.constant 8 : i32
    %31 = vector.broadcast %c8_i32_9 : i32 to vector<8x1xi32>
    %32 = arith.cmpi slt, %30, %31 : vector<8x1xi32>
    %cst_10 = arith.constant 0.000000e+00 : f32
    %33 = vector.broadcast %cst_10 : f32 to vector<8x1xf32>
    %34 = arith.select %32, %26, %33 : vector<8x1xi1>, vector<8x1xf32>
    %35 = vector.shape_cast %34 : vector<8x1xf32> to vector<1x8x1xf32>
    %cst_11 = arith.constant dense<0.000000e+00> : vector<1xf32>
    %36 = vector.multi_reduction <add>, %35, %cst_11 [1, 2] : vector<1x8x1xf32> to vector<1xf32>
    %37 = vector.shape_cast %36 : vector<1xf32> to vector<1x1x1xf32>
    %38 = vector.extract %37[0, 0, 0] : f32 from vector<1x1x1xf32>
    %c0_i32 = arith.constant 0 : i32
    %39 = arith.cmpi eq, %arg0, %c0_i32 : i32
    %40 = arith.extui %39 : i1 to i32
    %c0_i32_12 = arith.constant 0 : i32
    %41 = arith.cmpi ne, %40, %c0_i32_12 : i32
    scf.if %41 {
      %cst_19 = arith.constant 0.000000e+00 : f32
      %49 = vector.broadcast %cst_19 : f32 to vector<1x1xf32>
      %c0_20 = arith.constant 0 : index
      %c0_21 = arith.constant 0 : index
      %50 = vector.load %arg4[%c0_20, %c0_21] : memref<1x1xf32, #tpu.memory_space<vmem>>, vector<1x1xf32>
      tpu.vector_store %arg4[%c0_20, %c0_21], %49 {strides = array<i32>} : memref<1x1xf32, #tpu.memory_space<vmem>>, vector<1x1xf32>,
    } else {
    }
    %c0_13 = arith.constant 0 : index
    %c0_14 = arith.constant 0 : index
    %42 = vector.load %arg4[%c0_13, %c0_14] : memref<1x1xf32, #tpu.memory_space<vmem>>, vector<1x1xf32>
    %43 = vector.broadcast %38 : f32 to vector<1x1xf32>
    %44 = arith.addf %42, %43 : vector<1x1xf32>
    %c0_15 = arith.constant 0 : index
    %c0_16 = arith.constant 0 : index
    %45 = vector.load %arg4[%c0_15, %c0_16] : memref<1x1xf32, #tpu.memory_space<vmem>>, vector<1x1xf32>
    tpu.vector_store %arg4[%c0_15, %c0_16], %44 {strides = array<i32>} : memref<1x1xf32, #tpu.memory_space<vmem>>, vector<1x1xf32>,
    %c0_i32_17 = arith.constant 0 : i32
    %46 = arith.cmpi eq, %arg0, %c0_i32_17 : i32
    %47 = arith.extui %46 : i1 to i32
    %c0_i32_18 = arith.constant 0 : i32
    %48 = arith.cmpi ne, %47, %c0_i32_18 : i32
    scf.if %48 {
      %c0_19 = arith.constant 0 : index
      %c0_20 = arith.constant 0 : index
      %49 = vector.load %arg4[%c0_19, %c0_20] : memref<1x1xf32, #tpu.memory_space<vmem>>, vector<1x1xf32>
      %cst_21 = arith.constant 1.250000e-01 : f32
      %50 = vector.broadcast %cst_21 : f32 to vector<1x1xf32>
      %51 = arith.mulf %49, %50 : vector<1x1xf32>
      %c0_22 = arith.constant 0 : index
      %c0_23 = arith.constant 0 : index
      %52 = vector.load %arg3[%c0_22, %c0_23] : memref<1x1xf32, #tpu.memory_space<vmem>>, vector<1x1xf32>
      tpu.vector_store %arg3[%c0_22, %c0_23], %51 {strides = array<i32>} : memref<1x1xf32, #tpu.memory_space<vmem>>, vector<1x1xf32>,
    } else {
    }
    return
  }
  func.func @transform_0(%arg0: i32) -> (i32, i32) {
    %c0_i32 = arith.constant 0 : i32
    %c0_i32_0 = arith.constant 0 : i32
    return %arg0, %c0_i32 : i32, i32
  }
  func.func @transform_1(%arg0: i32) -> (i32, i32) {
    %c0_i32 = arith.constant 0 : i32
    %c0_i32_0 = arith.constant 0 : i32
    return %arg0, %c0_i32 : i32, i32
  }
  func.func @transform_2(%arg0: i32) -> (i32, i32) {
    %c0_i32 = arith.constant 0 : i32
    %c0_i32_0 = arith.constant 0 : i32
    %c0_i32_1 = arith.constant 0 : i32
    return %c0_i32, %c0_i32_0 : i32, i32
  }
}

</mosaic_0001>

<bundles_post_ra>
// kernel: tpu_custom_call.1
= control target key start
LH: loop header
LB: loop body
LE: loop exit
PB: predicated region body
PF: predicated region fallthrough
CT: control target
= control target key end

     0   :  { %vm23_vm0 = vcmask 130048   ;;  %s164_s0 = inlined_call_operand.vmem [shape: f32[8,16], index: 0, kind: input, shape index: {}]   ;;  %s165_s1 = inlined_call_operand.vmem [shape: s32[8,1], index: 1, kind: input, shape index: {}]   ;;  %s166_s2 = inlined_call_operand.hbm [shape: f32[1,1], index: 2, kind: output, shape index: {}]  }
   0x1   :  { %v12_v0 = vld [vmem:[%s164_s0] sm:$0xff] }
   0x2   :  { %7 = vsyncpa [#allocation4], 0  ;;  %v24_v1 = vsel %vm23_vm0, %v12_v0, -inf  ;;  %v122_v2 = vmov 0   ;;  %v13_v3 = vld [vmem:[%s165_s1] sm:$0xff]  ;;  %v19_v7 = vlaneseq  ;;  %vm46_vm2 = vcmask 7168  }
   0x3   :  { %93 = vset.pattern.permute.xlu0 %v122_v2  ;;  %vm61_vm3 = vcmask 0   ;;  %v123_v21 = vmov 0.0   ;;  %s124_s1 = smov [#allocation3]  }
   0x4   :  { %25 = vmax.xlane.f32.xlu0 %v24_v1  ;;  %v20_v8 = vand.u32 127, %v19_v7  ;;  %62 = vst.msk [vmem:[#allocation2] sm:$0x1] %vm61_vm3, %v123_v21  ;;  %s80_s13 = sshll.u32 %s124_s1, 4  ;;  %s81_s13 = int_to_ptr.vmem [resolvable:$true] %s80_s13 }
   0x5   :  { %s98_s14 = scalar_lea.vmem %s81_s13, 16  ;;  %s102_s15 = scalar_lea.vmem %s81_s13, 32 }
   0x6   :  { %p99_p0 = scmp.ne.s32.totalorder %s81_s13, %s98_s14  ;;  %p103_p1 = scmp.lt.s32.totalorder %s81_s13, %s81_s13 }
   0x7   :  { %p104_p2 = scmp.lt.s32.totalorder %s102_s15, %s98_s14 }
   0x9   :  { %p105_p3 = por %p104_p2, %p103_p1 }
   0xb   :  { %v63_v29 = vld [vmem:[#allocation2] sm:$0x1]  ;;  %p106_p4 = pnand %p105_p3, %p99_p0 }
  0x1a   :  { %37 = vperm.xlu0 %93, %v13_v3  }
  0x91   :  { %v26_v4 = vpop.xlane.xlu0 %25 }
  0x92   :  { %v27_v5 = vsub.f32 %v12_v0, %v26_v4 }
  0x94   :  { %v28_v6 = vmul.f32 1.442695, %v27_v5 }
  0x96   :  { %94 = vpow2.f32 %v28_v6 }
  0x99   :  { %v38_v9 = vpop.permute.xlu0 %37 }
  0x9a   :  { %vm39_vm1 = vcmp.eq.s32.totalorder %v20_v8, %v38_v9 }
  0x9b   :  { %v40_v11 = vsel %vm39_vm1, %v12_v0, 0.0 }
  0x9c   :  { %v41_v13 = vsel %vm23_vm0, %v40_v11, 0.0 }
  0xa0   :  { %v95_v10 = vpop.eup %94 }
  0xa1   :  { %v30_v12 = vsel %vm23_vm0, %v95_v10, 0.0 }
  0xa2   :  { %31 = vadd.xlane.f32.xlu1 %v30_v12 }
  0xa6   :  { %42 = vadd.xlane.f32.xlu1 %v41_v13 }
 0x12f   :  { %v32_v14 = vpop.xlane.xlu1 %31 }
 0x130   :  { %96 = vlog2.f32 %v32_v14 }
 0x133   :  { %v43_v17 = vpop.xlane.xlu1 %42 }
 0x13a   :  { %v97_v15 = vpop.eup %96 }
 0x13b   :  { %v34_v16 = vmul.f32 0.6931472, %v97_v15 }
 0x13d   :  { %v35_v18 = vadd.f32 %v34_v16, %v26_v4 }
 0x13f   :  { %v44_v19 = vsub.f32 %v35_v18, %v43_v17 }
 0x141   :  { %v47_v20 = vsel %vm46_vm2, %v44_v19, 0.0 }
 0x142   :  { %48 = vadd.xlane.f32.xlu1 %v47_v20 }
 0x1cf   :  { %v49_v22 = vpop.xlane.xlu1 %48 }
 0x1d0   :  { %v50_v23 = vrot.slane %v49_v22, 4 }
 0x1d2   :  { %v51_v24 = vadd.f32 %v50_v23, %v49_v22 }
 0x1d4   :  { %v52_v25 = vrot.slane %v51_v24, 2 }
 0x1d6   :  { %v53_v26 = vadd.f32 %v52_v25, %v51_v24 }
 0x1d8   :  { %v54_v27 = vrot.slane %v53_v26, 1 }
 0x1da   :  { %v55_v28 = vadd.f32 %v54_v27, %v53_v26 }
 0x1dc   :  { %88 = vpush %v55_v28 }
 0x20d   :  { %s89_s0 = spop %88 }
 0x20e   :  { %v64_v30 = vstv %s89_s0 }
 0x20f   :  { %v65_v31 = vadd.f32 %v64_v30, %v63_v29 }
 0x211   :  { %67 = vst.msk [vmem:[#allocation2] sm:$0x1] %vm61_vm3, %v65_v31 }
 0x218   :  { %v71_v32 = vld [vmem:[#allocation2] sm:$0x1] }
 0x219   :  { %v72_v33 = vmul.f32 0.125, %v71_v32 }
 0x21b   :  { %73 = vst.msk [vmem:[#allocation3] sm:$0x1] %vm61_vm3, %v72_v33 }
 0x21c   :  { %109 = shalt.err (!%p106_p4)
}
 0x21d   :  { %s110_s18 = scalar_lea.hbm %s166_s2, 16 }
 0x21e   :  { %p111_p5 = scmp.ne.s32.totalorder %s166_s2, %s110_s18  ;;  %p114_p6 = scmp.lt.u32.totalorder %s110_s18, %s166_s2 }
 0x220   :  { %p116_p7 = pnand %p114_p6, %p111_p5 }
 0x222   :  { %119 = shalt.err (!%p116_p7)
}
 0x223   :  { %83 = dma.vmem_to_hbm [thread:$0]  %s81_s13, 16, %s166_s2, [#allocation4]  }
 0x224   :  { %120 = dma.done.wait [#allocation4], 16  }
 0x225   :  { %121 = vsyncadd [#allocation4], 4294967280 }
 0x226   :  { %87 = vsyncpa [#allocation4], 1 }

</bundles_post_ra>
